<compile_context>
chip_gen: v7x
topology: tpu7x:2x2x1
jax: 0.10.0
libtpu: 0.0.40
codegen_flags: <defaults>
</compile_context>

<pallas_src>
import functools

import jax
import jax.numpy as jnp
from jax.experimental import pallas as pl
from jax.experimental.pallas import tpu as pltpu


def _round_up(x, m):
    return ((x + m - 1) // m) * m


def _tpu_hw_info():
    """One-time (import-time) hardware probe. Safe fallbacks everywhere."""
    vmem_cap = 64 << 20                       # conservative default: v7x has 64 MiB / TC
    try:
        info = pltpu.get_tpu_info()
        vmem_cap = int(getattr(info, "vmem_capacity_bytes", vmem_cap)) or vmem_cap
    except Exception:
        pass
    kind = ""
    try:
        kind = jax.devices()[0].device_kind.lower()
    except Exception:
        pass
    num_tc = 2 if "v7" in kind else 1         # v7x: 2 TensorCores / chip
    tb_cap = 128 if "v5" in kind else 256     # v5e MXU is 128 rows; bigger rows buy nothing
    return vmem_cap, num_tc, tb_cap


_VMEM_CAP, _NUM_TC, _TB_CAP = _tpu_hw_info()


def _mlp_kernel(x_ref, wT_ref, b_ref, o_ref, *, compute_dtype):
    # x_ref:  (tb, H)   activation tile in its original (f32) dtype; cast on the VPU
    # wT_ref: (H, tn)   weight column block, [in, out] layout (compute dtype, e.g. bf16)
    # b_ref:  (1, tn)   bias row (f32)
    # o_ref:  (tb, tn)  output tile (lane-dense: tn is a multiple of 128 or the full Hout)
    x = x_ref[...].astype(compute_dtype)
    y = jnp.dot(x, wT_ref[...], preferred_element_type=jnp.float32)   # MXU, f32 accumulate
    y = y + b_ref[...]                                                # f32 bias add
    o_ref[...] = jnp.tanh(y).astype(o_ref.dtype)                      # f32 tanh, cast on store


def prepare_mlp_params(weight, bias, compute_dtype=jnp.bfloat16):
    """One-time parameter prep (hoisted out of the per-call path).

    weight: [out_features, in_features]  (PyTorch nn.Linear layout)
    bias:   [out_features]
    Returns (wT [in, out] in compute_dtype, bias [1, out] in f32).
    """
    wT = jnp.asarray(weight).T.astype(compute_dtype)
    b2 = jnp.asarray(bias).reshape(1, -1).astype(jnp.float32)
    return wT, b2


def _pick_tiles(B, H, Hout, cbytes, obytes):
    """Choose (tb, tn) so everything fits the physical VMEM of this generation."""
    usable = max(_VMEM_CAP - (8 << 20), 16 << 20)     # leave ~8 MiB headroom

    # Batch tile: one big tile (grid steps are a serial loop on 1 TC).
    tb = min(max(8, _round_up(max(B, 1), 8)), _TB_CAP)

    # Column tile: largest divisor of Hout that is a multiple of 128 and fits the budget.
    cands = [d for d in range(128, Hout + 1, 128) if Hout % d == 0]
    if not cands:
        tn = Hout                                     # Hout not a multiple of 128: full dim
    else:
        weight_budget = usable // 2                   # double-buffered weight block budget
        fitting = [d for d in cands if 2 * H * d * cbytes <= weight_budget]
        tn = max(fitting) if fitting else min(cands)
        # Multi-TC (v7x): make sure there are >= 2 column blocks so the megacore split
        # shards the *weight columns* (batch split would duplicate the weight DMA).
        if _NUM_TC >= 2 and Hout // tn < 2:
            halves = [d for d in cands if d <= Hout // 2]
            if halves:
                hf = [d for d in halves if 2 * H * d * cbytes <= weight_budget]
                tn = max(hf) if hf else max(halves)

    def need_bytes(tb_, tn_):
        return (2 * H * tn_ * cbytes          # weight blocks (double buffered)
                + 2 * tn_ * 4                 # bias blocks
                + 2 * tb_ * H * 4             # f32 activation tiles (double buffered)
                + tb_ * H * cbytes            # in-kernel bf16 cast of x
                + 2 * tb_ * tn_ * obytes      # output tiles (double buffered)
                + 2 * tb_ * tn_ * 4)          # f32 dot / tanh intermediates

    # Shrink if the estimate still exceeds usable VMEM.
    while need_bytes(tb, tn) > usable and tb > 8:
        tb = max(8, _round_up(tb // 2, 8))
    if cands:
        for d in sorted((d for d in cands if d < tn), reverse=True):
            if need_bytes(tb, tn) <= usable:
                break
            tn = d

    return tb, tn, need_bytes(tb, tn), usable


def mlp_layer_prepared(features, wT, b2, *, tb=None, tn=None,
                       compute_dtype=jnp.bfloat16, out_dtype=None):
    """y = tanh(features @ wT + b) using pre-prepared parameters."""
    B, H = features.shape
    Hin, Hout = wT.shape
    assert Hin == H and b2.shape == (1, Hout)
    out_dtype = out_dtype or features.dtype
    cbytes = jnp.dtype(compute_dtype).itemsize
    obytes = jnp.dtype(out_dtype).itemsize

    auto_tb, auto_tn, need, _ = _pick_tiles(B, H, Hout, cbytes, obytes)
    tb = auto_tb if tb is None else max(8, _round_up(tb, 8))
    tn = auto_tn if tn is None else tn
    assert Hout % tn == 0 and (tn % 128 == 0 or tn == Hout), "invalid column tile"

    # Pad the batch so any B works with the chosen tile.
    Bp = _round_up(B, tb)
    x = features
    if Bp != B:
        x = jnp.pad(x, ((0, Bp - B), (0, 0)))

    n_b = Bp // tb
    n_n = Hout // tn
    # Columns outer, batch inner: the weight block is constant across the inner (batch)
    # loop, so it is fetched once per column block instead of once per batch tile.
    grid = (n_n, n_b)

    vmem_cap_limit = max(_VMEM_CAP - (4 << 20), 32 << 20)
    vmem_limit = int(min(max(need + (4 << 20), 32 << 20), vmem_cap_limit))

    kernel = functools.partial(_mlp_kernel, compute_dtype=compute_dtype)

    out = pl.pallas_call(
        kernel,
        out_shape=jax.ShapeDtypeStruct((Bp, Hout), out_dtype),
        grid_spec=pltpu.PrefetchScalarGridSpec(
            num_scalar_prefetch=0,
            grid=grid,
            in_specs=[
                pl.BlockSpec((tb, H), lambda j, i: (i, 0)),    # activations (f32)
                pl.BlockSpec((H, tn), lambda j, i: (0, j)),    # weight [in, out] (bf16)
                pl.BlockSpec((1, tn), lambda j, i: (0, j)),    # bias (f32)
            ],
            out_specs=pl.BlockSpec((tb, tn), lambda j, i: (i, j)),
        ),
        compiler_params=pltpu.CompilerParams(
            # Column axis parallel -> v7x megacore shards the weight columns across TCs;
            # batch axis arbitrary -> stays a serial loop (no duplicated weight DMA).
            dimension_semantics=("parallel", "arbitrary"),
            vmem_limit_bytes=vmem_limit,
        ),
    )(x, wT, b2)

    return out[:B] if Bp != B else out


def mlp_layer(features, weight, bias, **kwargs):
    """Drop-in equivalent of MLPLayer.forward with PyTorch parameter layout.

    For repeated calls, call prepare_mlp_params() once and use mlp_layer_prepared()
    so the weight transpose / cast is not redone every step.
    """
    compute_dtype = kwargs.get("compute_dtype", jnp.bfloat16)
    wT, b2 = prepare_mlp_params(weight, bias, compute_dtype)
    return mlp_layer_prepared(features, wT, b2, **kwargs)


if __name__ == "__main__":
    # Small, MLPLayer-consistent shapes: batch of CLS reps [B, hidden_size].
    B, H = 8, 128
    key = jax.random.PRNGKey(0)
    kx, kw, kb = jax.random.split(key, 3)

    features = jax.random.normal(kx, (B, H), dtype=jnp.float32)

    # Deterministic parameter init (mimics nn.Linear's uniform(-1/sqrt(H), 1/sqrt(H))).
    bound = 1.0 / (H ** 0.5)
    weight = jax.random.uniform(kw, (H, H), minval=-bound, maxval=bound, dtype=jnp.float32)
    bias = jax.random.uniform(kb, (H,), minval=-bound, maxval=bound, dtype=jnp.float32)

    # One-time parameter prep (hoisted transpose / cast), then the kernel call.
    wT, b2 = prepare_mlp_params(weight, bias)
    out = jax.block_until_ready(mlp_layer_prepared(features, wT, b2))

    ref = jnp.tanh(features @ weight.T + bias)
    assert out.shape == (B, H)
    assert out.dtype == features.dtype
    err = float(jnp.max(jnp.abs(out - ref)))
    assert err < 3e-2, f"mismatch vs reference: max abs err {err}"  # bf16-matmul tolerance

    # Also exercise the padded / non-divisible batch path (B not a multiple of the tile).
    B2 = 13
    features2 = jax.random.normal(jax.random.PRNGKey(1), (B2, H), dtype=jnp.float32)
    out2 = jax.block_until_ready(mlp_layer_prepared(features2, wT, b2))
    ref2 = jnp.tanh(features2 @ weight.T + bias)
    assert out2.shape == (B2, H)
    err2 = float(jnp.max(jnp.abs(out2 - ref2)))
    assert err2 < 3e-2, f"padded-batch mismatch: max abs err {err2}"

    print("KERNEL_OK")
</pallas_src>

<mosaic_0001>
module attributes {stable_mosaic.version = 11 : i64} {
  func.func @_mlp_kernel(%arg0: i32, %arg1: i32, %arg2: memref<8x128xf32, #tpu.memory_space<vmem>>, %arg3: memref<128x128xbf16, #tpu.memory_space<vmem>>, %arg4: memref<1x128xf32, #tpu.memory_space<vmem>>, %arg5: memref<8x128xf32, #tpu.memory_space<vmem>>) attributes {dimension_semantics = [#tpu.dimension_semantics<parallel>, #tpu.dimension_semantics<arbitrary>], iteration_bounds = array<i64: 1, 1>, scalar_prefetch = 0 : i64, scratch_operands = 0 : i64, tpu.core_type = #tpu.core_type<tc>, window_params = [{transform_indices = @transform_0, window_bounds = array<i64: 8, 128>}, {transform_indices = @transform_1, window_bounds = array<i64: 128, 128>}, {transform_indices = @transform_2, window_bounds = array<i64: 1, 128>}, {transform_indices = @transform_3, window_bounds = array<i64: 8, 128>}]} {
    %c0 = arith.constant 0 : index
    %c0_0 = arith.constant 0 : index
    %0 = vector.load %arg2[%c0, %c0_0] : memref<8x128xf32, #tpu.memory_space<vmem>>, vector<8x128xf32>
    %1 = arith.truncf %0 : vector<8x128xf32> to vector<8x128xbf16>
    %c0_1 = arith.constant 0 : index
    %c0_2 = arith.constant 0 : index
    %2 = vector.load %arg3[%c0_1, %c0_2] : memref<128x128xbf16, #tpu.memory_space<vmem>>, vector<128x128xbf16>
    %cst = arith.constant dense<0.000000e+00> : vector<8x128xf32>
    %3 = tpu.matmul %1, %2, %cst {dimension_numbers = #tpu.dot_dimension_numbers<[1], [0], [0], [1], [0, 0, 1, 1], [], []>} : vector<8x128xbf16>, vector<128x128xbf16>, vector<8x128xf32> -> vector<8x128xf32>
    %c0_3 = arith.constant 0 : index
    %c0_4 = arith.constant 0 : index
    %4 = vector.load %arg4[%c0_3, %c0_4] : memref<1x128xf32, #tpu.memory_space<vmem>>, vector<1x128xf32>
    %5 = vector.broadcast %4 : vector<1x128xf32> to vector<8x128xf32>
    %6 = arith.addf %3, %5 : vector<8x128xf32>
    %7 = math.tanh %6 : vector<8x128xf32>
    %c0_5 = arith.constant 0 : index
    %c0_6 = arith.constant 0 : index
    %8 = vector.load %arg5[%c0_5, %c0_6] : memref<8x128xf32, #tpu.memory_space<vmem>>, vector<8x128xf32>
    tpu.vector_store %arg5[%c0_5, %c0_6], %7 {strides = array<i32>} : memref<8x128xf32, #tpu.memory_space<vmem>>, vector<8x128xf32>,
    return
  }
  func.func @transform_0(%arg0: i32, %arg1: i32) -> (i32, i32) {
    %c0_i32 = arith.constant 0 : i32
    %c0_i32_0 = arith.constant 0 : i32
    return %arg1, %c0_i32 : i32, i32
  }
  func.func @transform_1(%arg0: i32, %arg1: i32) -> (i32, i32) {
    %c0_i32 = arith.constant 0 : i32
    %c0_i32_0 = arith.constant 0 : i32
    return %c0_i32, %arg0 : i32, i32
  }
  func.func @transform_2(%arg0: i32, %arg1: i32) -> (i32, i32) {
    %c0_i32 = arith.constant 0 : i32
    %c0_i32_0 = arith.constant 0 : i32
    return %c0_i32, %arg0 : i32, i32
  }
  func.func @transform_3(%arg0: i32, %arg1: i32) -> (i32, i32) {
    %c0_i32 = arith.constant 0 : i32
    return %arg1, %arg0 : i32, i32
  }
}

</mosaic_0001>

<bundles_post_ra>
// kernel: tpu_custom_call.1
= control target key start
LH: loop header
LB: loop body
LE: loop exit
PB: predicated region body
PF: predicated region fallthrough
CT: control target
= control target key end

     0   :  { %8 = vsyncpa [#allocation3], 0  ;;  %s373_s0 = inlined_call_operand.hbm [shape: f32[8,128], index: 0, kind: input, shape index: {}]   ;;  %s374_s1 = inlined_call_operand.hbm [shape: bf16[128,128], index: 1, kind: input, shape index: {}]   ;;  %s375_s2 = inlined_call_operand.vmem [shape: f32[1,128], index: 2, kind: input, shape index: {}]   ;;  %s376_s3 = inlined_call_operand.hbm [shape: f32[8,128], index: 3, kind: output, shape index: {}]  }
   0x1   :  { %9 = vsyncpa [#allocation6], 0 }
   0x2   :  { %10 = vsyncpa [#allocation4], 0  ;;  %s300_s12 = smov [#allocation2]   ;;  %s301_s14 = smov [#allocation5]  }
   0x3   :  { %s17_s13 = sshll.u32 %s300_s12, 4  ;;  %s26_s15 = sshll.u32 %s301_s14, 4  ;;  %s18_s13 = int_to_ptr.vmem [resolvable:$true] %s17_s13  ;;  %s327_s15 = int_to_ptr.vmem [resolvable:$true] %s26_s15 }
   0x4   :  { %s228_s18 = scalar_lea.hbm %s373_s0, 128 }
   0x5   :  { %p229_p0 = scmp.ne.s32.totalorder %s373_s0, %s228_s18  ;;  %p232_p1 = scmp.lt.u32.totalorder %s228_s18, %s373_s0 }
   0x7   :  { %p234_p2 = pnand %p232_p1, %p229_p0 }
   0x9   :  { %237 = shalt.err (!%p234_p2)
}
   0xa   :  { %s238_s23 = scalar_lea.vmem %s18_s13, 128  ;;  %p243_p4 = scmp.lt.s32.totalorder %s18_s13, %s18_s13 }
   0xb   :  { %p239_p3 = scmp.ne.s32.totalorder %s18_s13, %s238_s23  ;;  %p244_p5 = scmp.lt.s32.totalorder %s238_s23, %s238_s23 }
   0xd   :  { %p245_p6 = por %p244_p5, %p243_p4 }
   0xf   :  { %p246_p7 = pnand %p245_p6, %p239_p3 }
  0x11   :  { %249 = shalt.err (!%p246_p7)
}
  0x12   :  { %20 = dma.hbm_to_vmem [thread:$0]  %s373_s0, 128, %s18_s13, [#allocation3]  }
  0x13   :  { %s250_s28 = scalar_lea.hbm %s374_s1, 1024 }
  0x14   :  { %p251_p8 = scmp.ne.s32.totalorder %s374_s1, %s250_s28  ;;  %p254_p9 = scmp.lt.u32.totalorder %s250_s28, %s374_s1 }
  0x16   :  { %p256_p10 = pnand %p254_p9, %p251_p8 }
  0x18   :  { %259 = shalt.err (!%p256_p10)
}
  0x19   :  { %s260_s6 = scalar_lea.vmem %s327_s15, 1024  ;;  %p265_p12 = scmp.lt.s32.totalorder %s327_s15, %s327_s15 }
  0x1a   :  { %p261_p11 = scmp.ne.s32.totalorder %s327_s15, %s260_s6  ;;  %p266_p13 = scmp.lt.s32.totalorder %s260_s6, %s260_s6 }
  0x1c   :  { %p267_p0 = por %p266_p13, %p265_p12 }
  0x1e   :  { %p268_p1 = pnand %p267_p0, %p261_p11 }
  0x20   :  { %271 = shalt.err (!%p268_p1)
}
  0x21   :  { %s302_s0 = smov 64   ;;  %s303_s7 = smov 4  }
  0x22   :  { %32 = dma.hbm_to_vmem [thread:$0]  %s374_s1, 1024, %s327_s15, [#allocation6], %s302_s0, %s302_s0, %s303_s7  }
  0x23   :  { %294 = dma.done.wait [#allocation3], 128  }
  0x24   :  { %295 = vsyncadd [#allocation3], 4294967168 }
  0x25   :  { %296 = dma.done.wait [#allocation6], 1024  }
  0x26   :  { %297 = vsyncadd [#allocation6], 4294966272  ;;  %v304_v0 = vmov 0.0   ;;  %vm305_vm0 = vmmov 0   ;;  %v218_v1 = vld [vmem:[#allocation5] sm:$0xff]   ;;  %v219_v2 = vld [vmem:[#allocation5 + $0x8] sm:$0xff]  }
  0x27   :  { %191 = vmatprep.subr.bf16.mxu0 %v304_v0  ;;  %207 = vmatprep.mubr.msk.bf16.mxu0 %vm305_vm0, %v304_v0  ;;  %v220_v3 = vld [vmem:[#allocation5 + $0x10] sm:$0xff]   ;;  %v221_v4 = vld [vmem:[#allocation5 + $0x18] sm:$0xff]   ;;  %v222_v5 = vld [vmem:[#allocation5 + $0x20] sm:$0xff]   ;;  %s306_s11 = smov [#allocation7]  }
  0x28   :  { %192 = vmatpush3.bf16.msra.mxu0 %v218_v1  ;;  %v223_v6 = vld [vmem:[#allocation5 + $0x28] sm:$0xff]   ;;  %v224_v7 = vld [vmem:[#allocation5 + $0x30] sm:$0xff]   ;;  %v225_v8 = vld [vmem:[#allocation5 + $0x38] sm:$0xff]   ;;  %s163_s12 = sshll.u32 %s306_s11, 4  ;;  %s164_s12 = int_to_ptr.vmem [resolvable:$true] %s163_s12 }
  0x29   :  { %193 = vmatprep.subr.bf16.mxu0 %v304_v0  ;;  %v42_v9 = vld [vmem:[#allocation2] sm:$0xff]  ;;  %s272_s13 = scalar_lea.vmem %s164_s12, 128  ;;  %p277_p3 = scmp.lt.s32.totalorder %s164_s12, %s164_s12 }
  0x2a   :  { %v43_v10 = vpack.c.bf16 %v42_v9, %v42_v9  ;;  %v173_v11 = vld [vmem:[%s375_s2] ss:$0 sm:$0xff]  ;;  %p273_p2 = scmp.ne.s32.totalorder %s164_s12, %s272_s13  ;;  %p278_p4 = scmp.lt.s32.totalorder %s272_s13, %s272_s13 }
  0x2c   :  { %194 = vmatpush3.bf16.msra.mxu0 %v219_v2  ;;  %p279_p5 = por %p278_p4, %p277_p3 }
  0x2d   :  { %195 = vmatprep.subr.bf16.mxu0 %v304_v0 }
  0x2e   :  { %p280_p6 = pnand %p279_p5, %p273_p2 }
  0x30   :  { %196 = vmatpush3.bf16.msra.mxu0 %v220_v3 }
  0x31   :  { %197 = vmatprep.subr.bf16.mxu0 %v304_v0 }
  0x34   :  { %198 = vmatpush3.bf16.msra.mxu0 %v221_v4 }
  0x35   :  { %199 = vmatprep.subr.bf16.mxu0 %v304_v0 }
  0x38   :  { %200 = vmatpush3.bf16.msra.mxu0 %v222_v5 }
  0x39   :  { %201 = vmatprep.subr.bf16.mxu0 %v304_v0 }
  0x3c   :  { %202 = vmatpush3.bf16.msra.mxu0 %v223_v6 }
  0x3d   :  { %203 = vmatprep.subr.bf16.mxu0 %v304_v0 }
  0x40   :  { %204 = vmatpush3.bf16.msra.mxu0 %v224_v7 }
  0x41   :  { %205 = vmatprep.subr.bf16.mxu0 %v304_v0 }
  0x44   :  { %206 = vmatpush3.bf16.msra.mxu0 %v225_v8 }
  0x47   :  { %208 = vmatmul.mubr.bf16.vlgmr.msra.gmra.mrb[0].mxu0 %v43_v10 }
 0x11a   :  { %v149_v12 = vpop.f32.mrb[0].mxu0 }
 0x11b   :  { %v150_v13 = vadd.f32 %v173_v11, %v149_v12  ;;  %v209_v14 = vpop.f32.mrb[1].mxu0 }
 0x11c   :  { %v152_v15 = vpop.f32.mrb[2].mxu0 }
 0x11d   :  { %226 = vtanh.f32 %v150_v13  ;;  %v210_v16 = vpop.f32.mrb[3].mxu0 }
 0x127   :  { %v227_v17 = vpop.eup %226 }
 0x128   :  { %156 = vst [vmem:[#allocation7] sm:$0xff] %v227_v17 }
 0x129   :  { %283 = shalt.err (!%p280_p6)
}
 0x12a   :  { %s284_s15 = scalar_lea.hbm %s376_s3, 128 }
 0x12b   :  { %p285_p7 = scmp.ne.s32.totalorder %s376_s3, %s284_s15  ;;  %p288_p8 = scmp.lt.u32.totalorder %s284_s15, %s376_s3 }
 0x12d   :  { %p290_p9 = pnand %p288_p8, %p285_p7 }
 0x12f   :  { %293 = shalt.err (!%p290_p9)
}
 0x130   :  { %166 = dma.vmem_to_hbm [thread:$0]  %s164_s12, 128, %s376_s3, [#allocation4]  }
 0x131   :  { %298 = dma.done.wait [#allocation4], 128  }
 0x132   :  { %299 = vsyncadd [#allocation4], 4294967168 }
 0x133   :  { %170 = vsyncpa [#allocation3], 1 }
 0x134   :  { %171 = vsyncpa [#allocation6], 1 }
 0x135   :  { %172 = vsyncpa [#allocation4], 1 }

</bundles_post_ra>
